<compile_context>
chip_gen: v7x
topology: tpu7x:2x2x1
jax: 0.10.0
libtpu: 0.0.40
codegen_flags: <defaults>
</compile_context>

<pallas_src>
import jax
import jax.numpy as jnp
from jax.experimental import pallas as pl
from jax.experimental.pallas import tpu as pltpu


NEG_SLOPE = 0.01  # F.leaky_relu default negative_slope

# Padded layer widths (multiples of 128).
H1 = 400
H1_PAD = 512   # 400 -> 512
H2 = 256
H3 = 128
H4 = 32
H4_PAD = 128   # 32 -> 128

# Offsets inside the packed "aux" buffer (all multiples of 128).
B1_OFF = 0                    # b1: 512 lanes (400 real; lane 511 == 1.0 -> b2 fold)
B3_OFF = B1_OFF + H1_PAD      # b3: 128 lanes
B4_OFF = B3_OFF + H3          # b4: 128 lanes (32 real; lane 127 == 1.0 -> b5 fold)
W5_OFF = B4_OFF + H4_PAD      # w5 row: 128 lanes (32 real; lane 127 == b5)
AUX_W = W5_OFF + H4_PAD       # 896


def _cdiv(a, b):
    return -(-a // b)


def _round_up(a, m):
    return _cdiv(a, m) * m


def _leaky_relu(v):
    # max(v, slope*v) == leaky_relu(v) for 0 < slope < 1; 2 VALU ops instead of 3.
    return jnp.maximum(v, NEG_SLOPE * v)


def mlp_kernel(x_ref, w1_ref, w2_ref, w3_ref, w4_ref, aux_ref, o_ref):
    # x_ref: (TB, D) f32 straight from HBM; cast to bf16 in VMEM (no wrapper pad/cast).
    x = x_ref[...].astype(jnp.bfloat16)

    # fc1: (TB, D) @ (D, 512) -> f32 accumulate.  Bias b1 added in f32; its lane 511 is
    # 1.0 so h1[:, 511] == leaky_relu(1) == 1 and carries b2 through the fc2 matmul.
    h = jnp.dot(x, w1_ref[...], preferred_element_type=jnp.float32)
    h = _leaky_relu(h + aux_ref[:, B1_OFF:B1_OFF + H1_PAD])
    # dropout (p=0.2) -> identity in eval mode

    # fc2: (TB, 512) @ (512, 256); b2 is folded into w2 row 511 -> no bias add here.
    h = jnp.dot(h.astype(jnp.bfloat16), w2_ref[...], preferred_element_type=jnp.float32)
    h = _leaky_relu(h)

    # fc3: (TB, 256) @ (256, 128)
    h = jnp.dot(h.astype(jnp.bfloat16), w3_ref[...], preferred_element_type=jnp.float32)
    h = _leaky_relu(h + aux_ref[:, B3_OFF:B3_OFF + H3])

    # fc4: (TB, 128) @ (128, 128); cols 32..127 are zero-padded, and b4 lane 127 == 1.0
    # so h4[:, 127] == 1 (the constant-1 lane that folds b5 in below).
    h = jnp.dot(h.astype(jnp.bfloat16), w4_ref[...], preferred_element_type=jnp.float32)
    h = _leaky_relu(h + aux_ref[:, B4_OFF:B4_OFF + H4_PAD])

    # fc5: (1, 128) . (TB, 128)^T -> (1, TB), lane-dense output (q@k.T pattern).
    # w5 lane 127 holds b5, matched by h's constant-1 lane 127.  M=1 f32 matmul: MXU
    # cost is negligible and the rhs transpose rides the XLU, which has slack here.
    w5 = aux_ref[:, W5_OFF:W5_OFF + H4_PAD]           # (1, 128) f32
    out = jnp.dot(w5, h.T, preferred_element_type=jnp.float32)   # (1, TB)

    o_ref[0] = out.astype(o_ref.dtype)                # o_ref: (1, 1, TB)


def pack_params(params):
    """One-time preprocessing: pad hidden widths to 128-multiples, cast matmul weights
    to bf16, pack biases + fc5 row into a single lane-padded f32 aux buffer, and fold
    b2 / b5 into the fc2 / fc5 weights via constant-1 padded lanes."""
    input_size = params["w1"].shape[0]

    # Guards for the bias-fold lanes: they need a spare (zero-padded) lane and rely on
    # leaky_relu(1) == 1 (true for any negative_slope).  If the real layer widths ever
    # reach the padded widths, these folds must be removed.
    assert params["w1"].shape[1] == H1 and H1 < H1_PAD
    assert params["w4"].shape[1] == H4 and H4 < H4_PAD

    w1p = jnp.zeros((input_size, H1_PAD), jnp.float32).at[:, :H1].set(params["w1"])
    w2p = jnp.zeros((H1_PAD, H2), jnp.float32).at[:H1, :].set(params["w2"])
    w2p = w2p.at[H1_PAD - 1, :].set(params["b2"][0])      # b2 fold (h1 lane 511 == 1.0)
    w3p = params["w3"].astype(jnp.float32)
    w4p = jnp.zeros((H3, H4_PAD), jnp.float32).at[:, :H4].set(params["w4"])

    aux = jnp.zeros((1, AUX_W), jnp.float32)
    aux = aux.at[0, B1_OFF:B1_OFF + H1].set(params["b1"][0])
    aux = aux.at[0, B1_OFF + H1_PAD - 1].set(1.0)          # constant-1 lane -> b2 fold
    aux = aux.at[0, B3_OFF:B3_OFF + H3].set(params["b3"][0])
    aux = aux.at[0, B4_OFF:B4_OFF + H4].set(params["b4"][0])
    aux = aux.at[0, B4_OFF + H4_PAD - 1].set(1.0)          # constant-1 lane -> b5 fold
    aux = aux.at[0, W5_OFF:W5_OFF + H4].set(params["w5"][:, 0])
    aux = aux.at[0, W5_OFF + H4_PAD - 1].set(params["b5"][0, 0])

    return {
        "w1": w1p.astype(jnp.bfloat16),
        "w2": w2p.astype(jnp.bfloat16),
        "w3": w3p.astype(jnp.bfloat16),
        "w4": w4p.astype(jnp.bfloat16),
        "aux": aux,   # f32: b1(+fold), b3, b4(+fold), w5 row(+b5)
    }


def classification_network_forward(x, packed, *, max_tile_b=2048,
                                   vmem_limit_bytes=32 * 1024 * 1024):
    """x: (B, input_size) float32 (or bfloat16).  packed: output of pack_params.

    v5e/v6e: can pass max_tile_b=4096-8192 with vmem_limit_bytes=64-96 MiB.
    v7x:     keep max_tile_b <= ~3072 (64 MiB VMEM); an even tile count (automatic
             for B > max_tile_b) lets the 'parallel' axis use both TensorCores.
    """
    B, D = x.shape
    assert packed["w1"].shape[0] == D, (packed["w1"].shape, D)

    # Batch tiling: big tiles amortize the fixed per-grid-step cost; keep n_tiles even
    # when >1 (v7x megacore) and TB ~= B/n_tiles rounded to 8 so padding waste is tiny.
    n_tiles = max(1, _cdiv(B, max_tile_b))
    if n_tiles > 1 and n_tiles % 2:
        n_tiles += 1
    TB = _round_up(_cdiv(B, n_tiles), 8)

    out = pl.pallas_call(
        mlp_kernel,
        out_shape=jax.ShapeDtypeStruct((n_tiles, 1, TB), jnp.float32),
        grid_spec=pltpu.PrefetchScalarGridSpec(
            num_scalar_prefetch=0,
            grid=(n_tiles,),
            in_specs=[
                # x is consumed directly from HBM (no materialized pad/cast pass).
                # The last tile may extend past row B; those rows are row-independent
                # garbage and are sliced off in the wrapper.
                pl.BlockSpec((TB, D), lambda i: (i, 0)),
                # Weights and the packed aux buffer stay VMEM-resident
                # (constant index maps -> fetched once).
                pl.BlockSpec(packed["w1"].shape, lambda i: (0, 0)),
                pl.BlockSpec(packed["w2"].shape, lambda i: (0, 0)),
                pl.BlockSpec(packed["w3"].shape, lambda i: (0, 0)),
                pl.BlockSpec(packed["w4"].shape, lambda i: (0, 0)),
                pl.BlockSpec(packed["aux"].shape, lambda i: (0, 0)),
            ],
            # Lane-dense output: one (1, TB) row per tile instead of a (TB, 1) column.
            out_specs=pl.BlockSpec((1, 1, TB), lambda i: (i, 0, 0)),
        ),
        compiler_params=pltpu.CompilerParams(
            dimension_semantics=("parallel",),   # shards batch tiles across v7x's 2 TCs
            vmem_limit_bytes=vmem_limit_bytes,
        ),
    )(x, packed["w1"], packed["w2"], packed["w3"], packed["w4"], packed["aux"])

    return out.reshape(n_tiles * TB, 1)[:B]


def init_params(key, input_size):
    """Deterministic init matching nn.Linear's conventions.
    Weights stored transposed, i.e. (in_features, out_features)."""
    dims = [input_size, 400, 256, 128, 32, 1]
    params = {}
    for k in range(1, 6):
        fan_in, fan_out = dims[k - 1], dims[k]
        key, wk, bk = jax.random.split(key, 3)
        bound = 1.0 / jnp.sqrt(jnp.float32(fan_in))
        params[f"w{k}"] = jax.random.uniform(
            wk, (fan_in, fan_out), jnp.float32, -bound, bound)
        params[f"b{k}"] = jax.random.uniform(
            bk, (1, fan_out), jnp.float32, -bound, bound)
    return params


def reference_forward(x, params):
    h = x
    for k in range(1, 5):
        h = _leaky_relu(h @ params[f"w{k}"] + params[f"b{k}"])
    return h @ params["w5"] + params["b5"]


if __name__ == "__main__":
    B = 8
    INPUT_SIZE = 128

    key = jax.random.PRNGKey(0)
    key, xk = jax.random.split(key)
    x = jax.random.normal(xk, (B, INPUT_SIZE), jnp.float32)
    params = init_params(key, INPUT_SIZE)
    packed = pack_params(params)

    out = classification_network_forward(x, packed)
    out = jax.block_until_ready(out)

    ref = reference_forward(x, params)
    assert out.shape == (B, 1), out.shape
    max_err = float(jnp.max(jnp.abs(out - ref)))
    # bf16 weight/activation streaming (f32 accumulation) -> looser tolerance than pure f32.
    assert max_err < 5e-2, f"max abs err {max_err}"

    print("KERNEL_OK")
</pallas_src>

<mosaic_0001>
module attributes {stable_mosaic.version = 11 : i64} {
  func.func @mlp_kernel(%arg0: i32, %arg1: memref<8x128xf32, #tpu.memory_space<vmem>>, %arg2: memref<128x512xbf16, #tpu.memory_space<vmem>>, %arg3: memref<512x256xbf16, #tpu.memory_space<vmem>>, %arg4: memref<256x128xbf16, #tpu.memory_space<vmem>>, %arg5: memref<128x128xbf16, #tpu.memory_space<vmem>>, %arg6: memref<1x896xf32, #tpu.memory_space<vmem>>, %arg7: memref<1x1x8xf32, #tpu.memory_space<vmem>>) attributes {dimension_semantics = [#tpu.dimension_semantics<parallel>], iteration_bounds = array<i64: 1>, scalar_prefetch = 0 : i64, scratch_operands = 0 : i64, tpu.core_type = #tpu.core_type<tc>, window_params = [{transform_indices = @transform_0, window_bounds = array<i64: 8, 128>}, {pipeline_mode = #tpu.pipeline_mode<synchronous>, transform_indices = @transform_1, window_bounds = array<i64: 128, 512>}, {pipeline_mode = #tpu.pipeline_mode<synchronous>, transform_indices = @transform_2, window_bounds = array<i64: 512, 256>}, {pipeline_mode = #tpu.pipeline_mode<synchronous>, transform_indices = @transform_3, window_bounds = array<i64: 256, 128>}, {pipeline_mode = #tpu.pipeline_mode<synchronous>, transform_indices = @transform_4, window_bounds = array<i64: 128, 128>}, {pipeline_mode = #tpu.pipeline_mode<synchronous>, transform_indices = @transform_5, window_bounds = array<i64: 1, 896>}, {transform_indices = @transform_6, window_bounds = array<i64: 1, 1, 8>}]} {
    %c0 = arith.constant 0 : index
    %c0_0 = arith.constant 0 : index
    %0 = vector.load %arg1[%c0, %c0_0] : memref<8x128xf32, #tpu.memory_space<vmem>>, vector<8x128xf32>
    %1 = arith.truncf %0 : vector<8x128xf32> to vector<8x128xbf16>
    %c0_1 = arith.constant 0 : index
    %c0_2 = arith.constant 0 : index
    %2 = vector.load %arg2[%c0_1, %c0_2] : memref<128x512xbf16, #tpu.memory_space<vmem>>, vector<128x512xbf16>
    %cst = arith.constant dense<0.000000e+00> : vector<8x512xf32>
    %3 = tpu.matmul %1, %2, %cst {dimension_numbers = #tpu.dot_dimension_numbers<[1], [0], [0], [1], [0, 0, 1, 1], [], []>} : vector<8x128xbf16>, vector<128x512xbf16>, vector<8x512xf32> -> vector<8x512xf32>
    %c0_3 = arith.constant 0 : index
    %c0_4 = arith.constant 0 : index
    %4 = vector.load %arg6[%c0_3, %c0_4] : memref<1x896xf32, #tpu.memory_space<vmem>>, vector<1x512xf32>
    %5 = vector.broadcast %4 : vector<1x512xf32> to vector<8x512xf32>
    %6 = arith.addf %3, %5 : vector<8x512xf32>
    %cst_5 = arith.constant 0.00999999977 : f32
    %7 = vector.broadcast %cst_5 : f32 to vector<8x512xf32>
    %8 = arith.mulf %7, %6 : vector<8x512xf32>
    %9 = arith.maximumf %6, %8 : vector<8x512xf32>
    %10 = arith.truncf %9 : vector<8x512xf32> to vector<8x512xbf16>
    %c0_6 = arith.constant 0 : index
    %c0_7 = arith.constant 0 : index
    %11 = vector.load %arg3[%c0_6, %c0_7] : memref<512x256xbf16, #tpu.memory_space<vmem>>, vector<512x256xbf16>
    %cst_8 = arith.constant dense<0.000000e+00> : vector<8x256xf32>
    %12 = tpu.matmul %10, %11, %cst_8 {dimension_numbers = #tpu.dot_dimension_numbers<[1], [0], [0], [1], [0, 0, 1, 1], [], []>} : vector<8x512xbf16>, vector<512x256xbf16>, vector<8x256xf32> -> vector<8x256xf32>
    %cst_9 = arith.constant 0.00999999977 : f32
    %13 = vector.broadcast %cst_9 : f32 to vector<8x256xf32>
    %14 = arith.mulf %13, %12 : vector<8x256xf32>
    %15 = arith.maximumf %12, %14 : vector<8x256xf32>
    %16 = arith.truncf %15 : vector<8x256xf32> to vector<8x256xbf16>
    %c0_10 = arith.constant 0 : index
    %c0_11 = arith.constant 0 : index
    %17 = vector.load %arg4[%c0_10, %c0_11] : memref<256x128xbf16, #tpu.memory_space<vmem>>, vector<256x128xbf16>
    %cst_12 = arith.constant dense<0.000000e+00> : vector<8x128xf32>
    %18 = tpu.matmul %16, %17, %cst_12 {dimension_numbers = #tpu.dot_dimension_numbers<[1], [0], [0], [1], [0, 0, 1, 1], [], []>} : vector<8x256xbf16>, vector<256x128xbf16>, vector<8x128xf32> -> vector<8x128xf32>
    %c0_13 = arith.constant 0 : index
    %c512 = arith.constant 512 : index
    %19 = vector.load %arg6[%c0_13, %c512] : memref<1x896xf32, #tpu.memory_space<vmem>>, vector<1x128xf32>
    %20 = vector.broadcast %19 : vector<1x128xf32> to vector<8x128xf32>
    %21 = arith.addf %18, %20 : vector<8x128xf32>
    %cst_14 = arith.constant 0.00999999977 : f32
    %22 = vector.broadcast %cst_14 : f32 to vector<8x128xf32>
    %23 = arith.mulf %22, %21 : vector<8x128xf32>
    %24 = arith.maximumf %21, %23 : vector<8x128xf32>
    %25 = arith.truncf %24 : vector<8x128xf32> to vector<8x128xbf16>
    %c0_15 = arith.constant 0 : index
    %c0_16 = arith.constant 0 : index
    %26 = vector.load %arg5[%c0_15, %c0_16] : memref<128x128xbf16, #tpu.memory_space<vmem>>, vector<128x128xbf16>
    %cst_17 = arith.constant dense<0.000000e+00> : vector<8x128xf32>
    %27 = tpu.matmul %25, %26, %cst_17 {dimension_numbers = #tpu.dot_dimension_numbers<[1], [0], [0], [1], [0, 0, 1, 1], [], []>} : vector<8x128xbf16>, vector<128x128xbf16>, vector<8x128xf32> -> vector<8x128xf32>
    %c0_18 = arith.constant 0 : index
    %c640 = arith.constant 640 : index
    %28 = vector.load %arg6[%c0_18, %c640] : memref<1x896xf32, #tpu.memory_space<vmem>>, vector<1x128xf32>
    %29 = vector.broadcast %28 : vector<1x128xf32> to vector<8x128xf32>
    %30 = arith.addf %27, %29 : vector<8x128xf32>
    %cst_19 = arith.constant 0.00999999977 : f32
    %31 = vector.broadcast %cst_19 : f32 to vector<8x128xf32>
    %32 = arith.mulf %31, %30 : vector<8x128xf32>
    %33 = arith.maximumf %30, %32 : vector<8x128xf32>
    %c0_20 = arith.constant 0 : index
    %c768 = arith.constant 768 : index
    %34 = vector.load %arg6[%c0_20, %c768] : memref<1x896xf32, #tpu.memory_space<vmem>>, vector<1x128xf32>
    %35 = tpu.transpose %33, [1, 0] : vector<8x128xf32> -> vector<128x8xf32>
    %cst_21 = arith.constant dense<0.000000e+00> : vector<1x8xf32>
    %36 = tpu.matmul %34, %35, %cst_21 {dimension_numbers = #tpu.dot_dimension_numbers<[1], [0], [0], [1], [0, 0, 1, 1], [], []>} : vector<1x128xf32>, vector<128x8xf32>, vector<1x8xf32> -> vector<1x8xf32>
    %c0_22 = arith.constant 0 : index
    %c0_23 = arith.constant 0 : index
    %c0_24 = arith.constant 0 : index
    %37 = vector.load %arg7[%c0_22, %c0_23, %c0_24] : memref<1x1x8xf32, #tpu.memory_space<vmem>>, vector<1x1x8xf32>
    %38 = vector.shape_cast %37 : vector<1x1x8xf32> to vector<1x8xf32>
    %39 = vector.shape_cast %36 : vector<1x8xf32> to vector<1x1x8xf32>
    tpu.vector_store %arg7[%c0_22, %c0_23, %c0_24], %39 {strides = array<i32>} : memref<1x1x8xf32, #tpu.memory_space<vmem>>, vector<1x1x8xf32>,
    return
  }
  func.func @transform_0(%arg0: i32) -> (i32, i32) {
    %c0_i32 = arith.constant 0 : i32
    %c0_i32_0 = arith.constant 0 : i32
    return %arg0, %c0_i32 : i32, i32
  }
  func.func @transform_1(%arg0: i32) -> (i32, i32) {
    %c0_i32 = arith.constant 0 : i32
    %c0_i32_0 = arith.constant 0 : i32
    %c0_i32_1 = arith.constant 0 : i32
    return %c0_i32, %c0_i32_0 : i32, i32
  }
  func.func @transform_2(%arg0: i32) -> (i32, i32) {
    %c0_i32 = arith.constant 0 : i32
    %c0_i32_0 = arith.constant 0 : i32
    %c0_i32_1 = arith.constant 0 : i32
    return %c0_i32, %c0_i32_0 : i32, i32
  }
  func.func @transform_3(%arg0: i32) -> (i32, i32) {
    %c0_i32 = arith.constant 0 : i32
    %c0_i32_0 = arith.constant 0 : i32
    %c0_i32_1 = arith.constant 0 : i32
    return %c0_i32, %c0_i32_0 : i32, i32
  }
  func.func @transform_4(%arg0: i32) -> (i32, i32) {
    %c0_i32 = arith.constant 0 : i32
    %c0_i32_0 = arith.constant 0 : i32
    %c0_i32_1 = arith.constant 0 : i32
    return %c0_i32, %c0_i32_0 : i32, i32
  }
  func.func @transform_5(%arg0: i32) -> (i32, i32) {
    %c0_i32 = arith.constant 0 : i32
    %c0_i32_0 = arith.constant 0 : i32
    %c0_i32_1 = arith.constant 0 : i32
    return %c0_i32, %c0_i32_0 : i32, i32
  }
  func.func @transform_6(%arg0: i32) -> (i32, i32, i32) {
    %c0_i32 = arith.constant 0 : i32
    %c0_i32_0 = arith.constant 0 : i32
    %c0_i32_1 = arith.constant 0 : i32
    return %arg0, %c0_i32, %c0_i32_0 : i32, i32, i32
  }
}

</mosaic_0001>

<bundles_post_ra>
// kernel: tpu_custom_call.1
= control target key start
LH: loop header
LB: loop body
LE: loop exit
PB: predicated region body
PF: predicated region fallthrough
CT: control target
= control target key end

     0   :  { %11 = vsyncpa [#allocation3], 0  ;;  %s1924_s0 = inlined_call_operand.hbm [shape: f32[8,128], index: 0, kind: input, shape index: {}]   ;;  %s1925_s1 = inlined_call_operand.hbm [shape: bf16[128,512], index: 1, kind: input, shape index: {}]   ;;  %s1926_s2 = inlined_call_operand.hbm [shape: bf16[512,256], index: 2, kind: input, shape index: {}]   ;;  %s1927_s3 = inlined_call_operand.hbm [shape: bf16[256,128], index: 3, kind: input, shape index: {}]   ;;  %s1928_s4 = inlined_call_operand.hbm [shape: bf16[128,128], index: 4, kind: input, shape index: {}]   ;;  %s1929_s5 = inlined_call_operand.vmem [shape: f32[1,896], index: 5, kind: input, shape index: {}]   ;;  %s1930_s6 = inlined_call_operand.hbm [shape: f32[1,1,8], index: 6, kind: output, shape index: {}]  }
   0x1   :  { %12 = vsyncpa [#allocation6], 0 }
   0x2   :  { %13 = vsyncpa [#allocation9], 0 }
   0x3   :  { %14 = vsyncpa [#allocation4], 0  ;;  %s1761_s21 = smov [#allocation5]   ;;  %s1621_s25 = scalar_lea.hbm %s1925_s1, 4096 }
   0x4   :  { %s30_s22 = sshll.u32 %s1761_s21, 4  ;;  %p1622_p0 = scmp.ne.s32.totalorder %s1925_s1, %s1621_s25  ;;  %s31_s22 = int_to_ptr.vmem [resolvable:$true] %s30_s22 }
   0x5   :  { %p1625_p1 = scmp.lt.u32.totalorder %s1621_s25, %s1925_s1 }
   0x7   :  { %p1627_p2 = pnand %p1625_p1, %p1622_p0 }
   0x9   :  { %1630 = shalt.err (!%p1627_p2)
}
   0xa   :  { %s1631_s30 = scalar_lea.vmem %s31_s22, 4096  ;;  %p1636_p4 = scmp.lt.s32.totalorder %s31_s22, %s31_s22 }
   0xb   :  { %p1632_p3 = scmp.ne.s32.totalorder %s31_s22, %s1631_s30  ;;  %p1637_p5 = scmp.lt.s32.totalorder %s1631_s30, %s1631_s30 }
   0xd   :  { %p1638_p6 = por %p1637_p5, %p1636_p4 }
   0xf   :  { %p1639_p7 = pnand %p1638_p6, %p1632_p3 }
  0x11   :  { %1642 = shalt.err (!%p1639_p7)
}
  0x12   :  { %s1762_s7 = smov 256   ;;  %s1763_s8 = smov 16  }
  0x13   :  { %36 = dma.hbm_to_vmem [thread:$0]  %s1925_s1, 4096, %s31_s22, [#allocation6], %s1762_s7, %s1762_s7, %s1763_s8  }
  0x14   :  { %s1764_s11 = smov [#allocation8]   ;;  %s1643_s15 = scalar_lea.hbm %s1927_s3, 2048 }
  0x15   :  { %s54_s12 = sshll.u32 %s1764_s11, 4  ;;  %p1644_p8 = scmp.ne.s32.totalorder %s1927_s3, %s1643_s15  ;;  %s55_s12 = int_to_ptr.vmem [resolvable:$true] %s54_s12 }
  0x16   :  { %p1647_p9 = scmp.lt.u32.totalorder %s1643_s15, %s1927_s3 }
  0x18   :  { %p1649_p10 = pnand %p1647_p9, %p1644_p8 }
  0x1a   :  { %1652 = shalt.err (!%p1649_p10)
}
  0x1b   :  { %s1653_s20 = scalar_lea.vmem %s55_s12, 2048  ;;  %p1658_p12 = scmp.lt.s32.totalorder %s55_s12, %s55_s12 }
  0x1c   :  { %p1654_p11 = scmp.ne.s32.totalorder %s55_s12, %s1653_s20  ;;  %p1659_p13 = scmp.lt.s32.totalorder %s1653_s20, %s1653_s20 }
  0x1e   :  { %p1660_p0 = por %p1659_p13, %p1658_p12 }
  0x20   :  { %p1661_p1 = pnand %p1660_p0, %p1654_p11 }
  0x22   :  { %1664 = shalt.err (!%p1661_p1)
}
  0x23   :  { %s1765_s1 = smov 64   ;;  %s1766_s21 = smov 4  }
  0x24   :  { %60 = dma.hbm_to_vmem [thread:$0]  %s1927_s3, 2048, %s55_s12, [#allocation9], %s1765_s1, %s1765_s1, %s1766_s21  }
  0x25   :  { %s1767_s24 = smov [#allocation2]   ;;  %s1768_s26 = smov [#allocation7]  }
  0x26   :  { %s21_s25 = sshll.u32 %s1767_s24, 4  ;;  %s42_s27 = sshll.u32 %s1768_s26, 4  ;;  %s22_s25 = int_to_ptr.vmem [resolvable:$true] %s21_s25  ;;  %s1838_s27 = int_to_ptr.vmem [resolvable:$true] %s42_s27 }
  0x27   :  { %s1665_s30 = scalar_lea.hbm %s1924_s0, 128 }
  0x28   :  { %p1666_p2 = scmp.ne.s32.totalorder %s1924_s0, %s1665_s30  ;;  %p1669_p3 = scmp.lt.u32.totalorder %s1665_s30, %s1924_s0 }
  0x2a   :  { %p1671_p4 = pnand %p1669_p3, %p1666_p2 }
  0x2c   :  { %1674 = shalt.err (!%p1671_p4)
}
  0x2d   :  { %s1675_s3 = scalar_lea.vmem %s22_s25, 128  ;;  %p1680_p6 = scmp.lt.s32.totalorder %s22_s25, %s22_s25 }
  0x2e   :  { %p1676_p5 = scmp.ne.s32.totalorder %s22_s25, %s1675_s3  ;;  %p1681_p7 = scmp.lt.s32.totalorder %s1675_s3, %s1675_s3 }
  0x30   :  { %p1682_p8 = por %p1681_p7, %p1680_p6 }
  0x32   :  { %p1683_p9 = pnand %p1682_p8, %p1676_p5 }
  0x34   :  { %1686 = shalt.err (!%p1683_p9)
}
  0x35   :  { %24 = dma.hbm_to_vmem [thread:$0]  %s1924_s0, 128, %s22_s25, [#allocation3]  }
  0x36   :  { %s1687_s15 = scalar_lea.hbm %s1926_s2, 8192 }
  0x37   :  { %p1688_p10 = scmp.ne.s32.totalorder %s1926_s2, %s1687_s15  ;;  %p1691_p11 = scmp.lt.u32.totalorder %s1687_s15, %s1926_s2 }
  0x39   :  { %p1693_p12 = pnand %p1691_p11, %p1688_p10 }
  0x3b   :  { %1696 = shalt.err (!%p1693_p12)
}
  0x3c   :  { %s1697_s20 = scalar_lea.vmem %s1838_s27, 8192  ;;  %p1702_p0 = scmp.lt.s32.totalorder %s1838_s27, %s1838_s27 }
  0x3d   :  { %p1698_p13 = scmp.ne.s32.totalorder %s1838_s27, %s1697_s20  ;;  %p1703_p1 = scmp.lt.s32.totalorder %s1697_s20, %s1697_s20 }
  0x3f   :  { %p1704_p2 = por %p1703_p1, %p1702_p0 }
  0x41   :  { %p1705_p3 = pnand %p1704_p2, %p1698_p13 }
  0x43   :  { %1708 = shalt.err (!%p1705_p3)
}
  0x44   :  { %s1769_s0 = smov 128   ;;  %s1770_s22 = smov 8  }
  0x45   :  { %48 = dma.hbm_to_vmem [thread:$0]  %s1926_s2, 8192, %s1838_s27, [#allocation6], %s1769_s0, %s1769_s0, %s1770_s22  }
  0x46   :  { %s1771_s25 = smov [#allocation10]   ;;  %s1709_s30 = scalar_lea.hbm %s1928_s4, 1024 }
  0x47   :  { %s66_s26 = sshll.u32 %s1771_s25, 4  ;;  %p1710_p4 = scmp.ne.s32.totalorder %s1928_s4, %s1709_s30  ;;  %s67_s26 = int_to_ptr.vmem [resolvable:$true] %s66_s26 }
  0x48   :  { %p1713_p5 = scmp.lt.u32.totalorder %s1709_s30, %s1928_s4 }
  0x4a   :  { %p1715_p6 = pnand %p1713_p5, %p1710_p4 }
  0x4c   :  { %1718 = shalt.err (!%p1715_p6)
}
  0x4d   :  { %s1719_s3 = scalar_lea.vmem %s67_s26, 1024  ;;  %p1724_p8 = scmp.lt.s32.totalorder %s67_s26, %s67_s26 }
  0x4e   :  { %p1720_p7 = scmp.ne.s32.totalorder %s67_s26, %s1719_s3  ;;  %p1725_p9 = scmp.lt.s32.totalorder %s1719_s3, %s1719_s3 }
  0x50   :  { %p1726_p10 = por %p1725_p9, %p1724_p8 }
  0x52   :  { %p1727_p11 = pnand %p1726_p10, %p1720_p7 }
  0x54   :  { %1730 = shalt.err (!%p1727_p11)
}
  0x55   :  { %72 = dma.hbm_to_vmem [thread:$0]  %s1928_s4, 1024, %s67_s26, [#allocation9], %s1765_s1, %s1765_s1, %s1766_s21  }
  0x56   :  { %1753 = dma.done.wait [#allocation3], 128  }
  0x57   :  { %1754 = vsyncadd [#allocation3], 4294967168 }
  0x58   :  { %1755 = dma.done.wait [#allocation6], 12288  }
  0x59   :  { %1756 = vsyncadd [#allocation6], 4294955008 }
  0x5a   :  { %1757 = dma.done.wait [#allocation9], 3072  }
  0x5b   :  { %1758 = vsyncadd [#allocation9], 4294964224  ;;  %v1772_v0 = vmov 0   ;;  %v1453_v1 = vld [vmem:[#allocation5 + $0x4] ss:$16 sps:$4 sm:$0xff]   ;;  %v91_v22 = vld [vmem:[#allocation2] sm:$0xff] }
  0x5c   :  { %339 = vmatprep.mubr.bf16.mxu1 %v1772_v0  ;;  %v1455_v2 = vld [vmem:[#allocation5] ss:$16 sps:$4 sm:$0xff]   ;;  %307 = vmatprep.subr.bf16.mxu1 %v1453_v1  ;;  %v1456_v3 = vld [vmem:[#allocation5 + $0x24] ss:$16 sps:$4 sm:$0xff]   ;;  %v1479_v23 = vld [vmem:[#allocation5 + $0xc] ss:$16 sps:$4 sm:$0xff]   ;;  %v1884_v25 = vpack.c.bf16 %v91_v22, %v91_v22 }
  0x5d   :  { %308 = vmatpush1.bf16.msra.mxu1 %v1455_v2  ;;  %v1458_v4 = vld [vmem:[#allocation5 + $0x20] ss:$16 sps:$4 sm:$0xff]   ;;  %v1459_v5 = vld [vmem:[#allocation5 + $0x44] ss:$16 sps:$4 sm:$0xff]   ;;  %v1477_v27 = vld [vmem:[#allocation5 + $0x8] ss:$16 sps:$4 sm:$0xff]  }
  0x5e   :  { %309 = vmatprep.subr.bf16.mxu1 %v1456_v3  ;;  %v1461_v6 = vld [vmem:[#allocation5 + $0x40] ss:$16 sps:$4 sm:$0xff]   ;;  %v1462_v7 = vld [vmem:[#allocation5 + $0x64] ss:$16 sps:$4 sm:$0xff]   ;;  %v1482_v28 = vld [vmem:[#allocation5 + $0x2c] ss:$16 sps:$4 sm:$0xff]  }
  0x5f   :  { %v1464_v8 = vld [vmem:[#allocation5 + $0x60] ss:$16 sps:$4 sm:$0xff]   ;;  %v1465_v9 = vld [vmem:[#allocation5 + $0x84] ss:$16 sps:$4 sm:$0xff]   ;;  %v1480_v31 = vld [vmem:[#allocation5 + $0x28] ss:$16 sps:$4 sm:$0xff]  }
  0x60   :  { %v1467_v10 = vld [vmem:[#allocation5 + $0x80] ss:$16 sps:$4 sm:$0xff]   ;;  %v1468_v11 = vld [vmem:[#allocation5 + $0xa4] ss:$16 sps:$4 sm:$0xff]   ;;  %v1485_v32 = vld [vmem:[#allocation5 + $0x4c] ss:$16 sps:$4 sm:$0xff]  }
  0x61   :  { %310 = vmatpush1.bf16.msra.mxu1 %v1458_v4  ;;  %v1470_v12 = vld [vmem:[#allocation5 + $0xa0] ss:$16 sps:$4 sm:$0xff]   ;;  %v1471_v13 = vld [vmem:[#allocation5 + $0xc4] ss:$16 sps:$4 sm:$0xff]   ;;  %v1483_v34 = vld [vmem:[#allocation5 + $0x48] ss:$16 sps:$4 sm:$0xff]  }
  0x62   :  { %311 = vmatprep.subr.bf16.mxu1 %v1459_v5  ;;  %v1473_v14 = vld [vmem:[#allocation5 + $0xc0] ss:$16 sps:$4 sm:$0xff]   ;;  %v1501_v15 = vld [vmem:[#allocation7 + $0x4] ss:$8 sps:$4 sm:$0xff]   ;;  %v1504_v17 = vld [vmem:[#allocation7 + $0x14] ss:$8 sps:$4 sm:$0xff]  }
  0x63   :  { %v1503_v16 = vld [vmem:[#allocation7] ss:$8 sps:$4 sm:$0xff]   ;;  %v1474_v18 = vld [vmem:[#allocation5 + $0xe4] ss:$16 sps:$4 sm:$0xff]   ;;  %785 = vmatprep.subr.bf16.mxu0 %v1501_v15  ;;  %v1506_v19 = vld [vmem:[#allocation7 + $0x10] ss:$8 sps:$4 sm:$0xff]  }
  0x64   :  { %786 = vmatpush1.bf16.msra.mxu0 %v1503_v16  ;;  %v1476_v20 = vld [vmem:[#allocation5 + $0xe0] ss:$16 sps:$4 sm:$0xff]   ;;  %v1507_v21 = vld [vmem:[#allocation7 + $0x24] ss:$8 sps:$4 sm:$0xff]   ;;  %v1510_v26 = vld [vmem:[#allocation7 + $0x34] ss:$8 sps:$4 sm:$0xff]   ;;  %v127_v16 = vlaneseq }
  0x65   :  { %312 = vmatpush1.bf16.msra.mxu1 %v1461_v6  ;;  %787 = vmatprep.subr.bf16.mxu0 %v1504_v17  ;;  %v1509_v24 = vld [vmem:[#allocation7 + $0x20] ss:$8 sps:$4 sm:$0xff]   ;;  %v1512_v29 = vld [vmem:[#allocation7 + $0x30] ss:$8 sps:$4 sm:$0xff]   ;;  %v1513_v30 = vld [vmem:[#allocation7 + $0x44] ss:$8 sps:$4 sm:$0xff]  }
  0x66   :  { %313 = vmatprep.subr.bf16.mxu1 %v1462_v7  ;;  %v1515_v33 = vld [vmem:[#allocation7 + $0x40] ss:$8 sps:$4 sm:$0xff]   ;;  %v1516_v35 = vld [vmem:[#allocation7 + $0x54] ss:$8 sps:$4 sm:$0xff]   ;;  %v1518_v37 = vld [vmem:[#allocation7 + $0x50] ss:$8 sps:$4 sm:$0xff]  }
  0x67   :  { %v1488_v36 = vld [vmem:[#allocation5 + $0x6c] ss:$16 sps:$4 sm:$0xff]   ;;  %v1486_v39 = vld [vmem:[#allocation5 + $0x68] ss:$16 sps:$4 sm:$0xff]   ;;  %v1597_v4 = vld [vmem:[#allocation8 + $0x40] sm:$0xff]   ;;  %v1888_v17 = vshrl.u32 %v127_v16, 7 }
  0x68   :  { %788 = vmatpush1.bf16.msra.mxu0 %v1506_v19  ;;  %v1519_v38 = vld [vmem:[#allocation7 + $0x64] ss:$8 sps:$4 sm:$0xff]   ;;  %v1521_v41 = vld [vmem:[#allocation7 + $0x60] ss:$8 sps:$4 sm:$0xff]   ;;  %v1522_v42 = vld [vmem:[#allocation7 + $0x74] ss:$8 sps:$4 sm:$0xff]  }
  0x69   :  { %314 = vmatpush1.bf16.msra.mxu1 %v1464_v8  ;;  %789 = vmatprep.subr.bf16.mxu0 %v1507_v21  ;;  %v1491_v40 = vld [vmem:[#allocation5 + $0x8c] ss:$16 sps:$4 sm:$0xff]   ;;  %v1489_v43 = vld [vmem:[#allocation5 + $0x88] ss:$16 sps:$4 sm:$0xff]   ;;  %v1598_v5 = vld [vmem:[#allocation8] sm:$0xff]   ;;  %vm1774_vm0 = vmmov 0  }
  0x6a   :  { %315 = vmatprep.subr.bf16.mxu1 %v1465_v9  ;;  %v1494_v44 = vld [vmem:[#allocation5 + $0xac] ss:$16 sps:$4 sm:$0xff]   ;;  %v1524_v45 = vld [vmem:[#allocation7 + $0x70] ss:$8 sps:$4 sm:$0xff]   ;;  %v1527_v49 = vld [vmem:[#allocation7 + $0x80] ss:$8 sps:$4 sm:$0xff]  }
  0x6b   :  { %v1525_v46 = vld [vmem:[#allocation7 + $0x84] ss:$8 sps:$4 sm:$0xff]   ;;  %v1492_v47 = vld [vmem:[#allocation5 + $0xa8] ss:$16 sps:$4 sm:$0xff]   ;;  %v1528_v50 = vld [vmem:[#allocation7 + $0x94] ss:$8 sps:$4 sm:$0xff]  }
  0x6c   :  { %790 = vmatpush1.bf16.msra.mxu0 %v1509_v24  ;;  %v1497_v48 = vld [vmem:[#allocation5 + $0xcc] ss:$16 sps:$4 sm:$0xff]   ;;  %v1495_v51 = vld [vmem:[#allocation5 + $0xc8] ss:$16 sps:$4 sm:$0xff]   ;;  %v1601_v8 = vld [vmem:[#allocation8 + $0x50] sm:$0xff]   ;;  %s1775_s16 = smov [#allocation11]  }
  0x6d   :  { %316 = vmatpush1.bf16.msra.mxu1 %v1467_v10  ;;  %791 = vmatprep.subr.bf16.mxu0 %v1510_v26  ;;  %v1500_v52 = vld [vmem:[#allocation5 + $0xec] ss:$16 sps:$4 sm:$0xff]   ;;  %v1530_v53 = vld [vmem:[#allocation7 + $0x90] ss:$8 sps:$4 sm:$0xff]   ;;  %v1533_v56 = vld [vmem:[#allocation7 + $0xa0] ss:$8 sps:$4 sm:$0xff]  }
  0x6e   :  { %317 = vmatprep.subr.bf16.mxu1 %v1468_v11  ;;  %v1531_v54 = vld [vmem:[#allocation7 + $0xa4] ss:$8 sps:$4 sm:$0xff]   ;;  %v1498_v55 = vld [vmem:[#allocation5 + $0xe8] ss:$16 sps:$4 sm:$0xff]   ;;  %v1534_v57 = vld [vmem:[#allocation7 + $0xb4] ss:$8 sps:$4 sm:$0xff]  }
  0x6f   :  { %v1536_v58 = vld [vmem:[#allocation7 + $0xb0] ss:$8 sps:$4 sm:$0xff]   ;;  %v1537_v59 = vld [vmem:[#allocation7 + $0xc4] ss:$8 sps:$4 sm:$0xff]   ;;  %v1539_v60 = vld [vmem:[#allocation7 + $0xc0] ss:$8 sps:$4 sm:$0xff]  }
  0x70   :  { %792 = vmatpush1.bf16.msra.mxu0 %v1512_v29  ;;  %v1540_v61 = vld [vmem:[#allocation7 + $0xd4] ss:$8 sps:$4 sm:$0xff]   ;;  %v1542_v62 = vld [vmem:[#allocation7 + $0xd0] ss:$8 sps:$4 sm:$0xff]   ;;  %v1543_v63 = vld [vmem:[#allocation7 + $0xe4] ss:$8 sps:$4 sm:$0xff]  }
  0x71   :  { %318 = vmatpush1.bf16.msra.mxu1 %v1470_v12  ;;  %793 = vmatprep.subr.bf16.mxu0 %v1513_v30  ;;  %v1546_v1 = vld [vmem:[#allocation7 + $0xf4] ss:$8 sps:$4 sm:$0xff]   ;;  %v1548_v2 = vld [vmem:[#allocation7 + $0xf0] ss:$8 sps:$4 sm:$0xff]   ;;  %v1551_v3 = vld [vmem:[#allocation7 + $0x104] ss:$8 sps:$4 sm:$0xff]  }
  0x72   :  { %319 = vmatprep.subr.bf16.mxu1 %v1471_v13  ;;  %v1599_v6 = vld [vmem:[#allocation8 + $0x48] sm:$0xff]   ;;  %v1602_v9 = vld [vmem:[#allocation8 + $0x10] sm:$0xff]   ;;  %v1603_v10 = vld [vmem:[#allocation8 + $0x58] sm:$0xff]   ;;  %s1243_s17 = sshll.u32 %s1775_s16, 4  ;;  %vm1235_vm1 = vcmask 57344   ;;  %s1244_s17 = int_to_ptr.vmem [resolvable:$true] %s1243_s17 }
  0x73   :  { %v1600_v7 = vld [vmem:[#allocation8 + $0x8] sm:$0xff]   ;;  %v1604_v11 = vld [vmem:[#allocation8 + $0x18] sm:$0xff]   ;;  %v1605_v12 = vld [vmem:[#allocation8 + $0x60] sm:$0xff]   ;;  %s1731_s18 = scalar_lea.vmem %s1244_s17, 16  ;;  %s1735_s19 = scalar_lea.vmem %s1244_s17, 32 }
  0x74   :  { %794 = vmatpush1.bf16.msra.mxu0 %v1515_v33  ;;  %v1606_v13 = vld [vmem:[#allocation8 + $0x20] sm:$0xff]   ;;  %v1608_v15 = vld [vmem:[#allocation8 + $0x28] sm:$0xff]   ;;  %v1894_v19 = vld [vmem:[%s1929_s5] sm:$0xf]  ;;  %p1732_p12 = scmp.ne.s32.totalorder %s1244_s17, %s1731_s18  ;;  %p1736_p13 = scmp.lt.s32.totalorder %s1244_s17, %s1244_s17 }
  0x75   :  { %320 = vmatpush1.bf16.msra.mxu1 %v1473_v14  ;;  %795 = vmatprep.subr.bf16.mxu0 %v1516_v35  ;;  %v1607_v14 = vld [vmem:[#allocation8 + $0x68] sm:$0xff]   ;;  %p1737_p0 = scmp.lt.s32.totalorder %s1735_s19, %s1731_s18 }
  0x76   :  { %321 = vmatprep.subr.bf16.mxu1 %v1474_v18  ;;  %v129_v18 = vsub.s32 0, %v1888_v17 }
  0x77   :  { %p1738_p1 = por %p1737_p0, %p1736_p13 }
  0x78   :  { %796 = vmatpush1.bf16.msra.mxu0 %v1518_v37  ;;  %v130_v21 = vrot.slane %v1894_v19, %v129_v18  ;;  %v1552_v37 = vld [vmem:[#allocation7 + $0x110] ss:$8 sps:$4 sm:$0xff]  }
  0x79   :  { %322 = vmatpush1.bf16.msra.mxu1 %v1476_v20  ;;  %797 = vmatprep.subr.bf16.mxu0 %v1519_v38  ;;  %v133_v20 = vsub.s32 1, %v1888_v17  ;;  %v1557_v38 = vld [vmem:[#allocation7 + $0x124] ss:$8 sps:$4 sm:$0xff]   ;;  %v1609_v18 = vld [vmem:[#allocation8 + $0x70] sm:$0xff]   ;;  %p1739_p2 = pnand %p1738_p1, %p1732_p12 }
  0x7a   :  { %348 = vmatprep.subr.bf16.mxu1 %v1479_v23 }
  0x7b   :  { %v134_v22 = vrot.slane %v1894_v19, %v133_v20  ;;  %v1611_v20 = vld [vmem:[#allocation8 + $0x78] sm:$0xff]  }
  0x7c   :  { %340 = vmatmul.mubr.bf16.vlgmr.msra.gmra.mrb[0].mxu1 %v1884_v25  ;;  %798 = vmatpush1.bf16.msra.mxu0 %v1521_v41  ;;  %v1558_v41 = vld [vmem:[#allocation7 + $0x130] ss:$8 sps:$4 sm:$0xff]  }
  0x7d   :  { %349 = vmatpush1.bf16.msra.mxu1 %v1477_v27  ;;  %380 = vmatprep.mubr.bf16.mxu1 %v1772_v0  ;;  %v1545_v0 = vld [vmem:[#allocation7 + $0xe0] ss:$8 sps:$4 sm:$0xff]  }
  0x7e   :  { %350 = vmatprep.subr.bf16.mxu1 %v1482_v28  ;;  %799 = vmatprep.subr.bf16.mxu0 %v1522_v42  ;;  %v1563_v42 = vld [vmem:[#allocation7 + $0x144] ss:$8 sps:$4 sm:$0xff]  }
  0x80   :  { %800 = vmatpush1.bf16.msra.mxu0 %v1524_v45  ;;  %v141_v45 = vsub.s32 3, %v1888_v17 }
  0x81   :  { %351 = vmatpush1.bf16.msra.mxu1 %v1480_v31  ;;  %801 = vmatprep.subr.bf16.mxu0 %v1525_v46  ;;  %v1564_v46 = vld [vmem:[#allocation7 + $0x150] ss:$8 sps:$4 sm:$0xff]  }
  0x82   :  { %352 = vmatprep.subr.bf16.mxu1 %v1485_v32 }
  0x84   :  { %802 = vmatpush1.bf16.msra.mxu0 %v1527_v49  ;;  %v1567_v49 = vld [vmem:[#allocation7 + $0x160] ss:$8 sps:$4 sm:$0xff]  }
  0x85   :  { %353 = vmatpush1.bf16.msra.mxu1 %v1483_v34  ;;  %803 = vmatprep.subr.bf16.mxu0 %v1528_v50  ;;  %v1549_v34 = vld [vmem:[#allocation7 + $0x100] ss:$8 sps:$4 sm:$0xff]  }
  0x86   :  { %354 = vmatprep.subr.bf16.mxu1 %v1488_v36  ;;  %v1554_v36 = vld [vmem:[#allocation7 + $0x114] ss:$8 sps:$4 sm:$0xff]  }
  0x88   :  { %804 = vmatpush1.bf16.msra.mxu0 %v1530_v53 }
  0x89   :  { %355 = vmatpush1.bf16.msra.mxu1 %v1486_v39  ;;  %805 = vmatprep.subr.bf16.mxu0 %v1531_v54  ;;  %v1555_v39 = vld [vmem:[#allocation7 + $0x120] ss:$8 sps:$4 sm:$0xff]  }
  0x8a   :  { %356 = vmatprep.subr.bf16.mxu1 %v1491_v40  ;;  %v1560_v40 = vld [vmem:[#allocation7 + $0x134] ss:$8 sps:$4 sm:$0xff]  }
  0x8c   :  { %806 = vmatpush1.bf16.msra.mxu0 %v1533_v56  ;;  %v1570_v56 = vld [vmem:[#allocation7 + $0x170] ss:$8 sps:$4 sm:$0xff]  }
  0x8d   :  { %357 = vmatpush1.bf16.msra.mxu1 %v1489_v43  ;;  %807 = vmatprep.subr.bf16.mxu0 %v1534_v57  ;;  %v1561_v43 = vld [vmem:[#allocation7 + $0x140] ss:$8 sps:$4 sm:$0xff]  }
  0x8e   :  { %358 = vmatprep.subr.bf16.mxu1 %v1494_v44  ;;  %v1566_v44 = vld [vmem:[#allocation7 + $0x154] ss:$8 sps:$4 sm:$0xff]  }
  0x90   :  { %808 = vmatpush1.bf16.msra.mxu0 %v1536_v58  ;;  %v1575_v58 = vld [vmem:[#allocation7 + $0x184] ss:$8 sps:$4 sm:$0xff]  }
  0x91   :  { %359 = vmatpush1.bf16.msra.mxu1 %v1492_v47  ;;  %809 = vmatprep.subr.bf16.mxu0 %v1537_v59  ;;  %v1569_v47 = vld [vmem:[#allocation7 + $0x164] ss:$8 sps:$4 sm:$0xff]  }
  0x92   :  { %360 = vmatprep.subr.bf16.mxu1 %v1497_v48  ;;  %v142_v48 = vrot.slane %v1894_v19, %v141_v45 }
  0x94   :  { %810 = vmatpush1.bf16.msra.mxu0 %v1539_v60  ;;  %v1573_v60 = vld [vmem:[#allocation7 + $0x180] ss:$8 sps:$4 sm:$0xff]  }
  0x95   :  { %361 = vmatpush1.bf16.msra.mxu1 %v1495_v51  ;;  %811 = vmatprep.subr.bf16.mxu0 %v1540_v61  ;;  %v1572_v51 = vld [vmem:[#allocation7 + $0x174] ss:$8 sps:$4 sm:$0xff]  }
  0x96   :  { %362 = vmatprep.subr.bf16.mxu1 %v1500_v52 }
  0x98   :  { %812 = vmatpush1.bf16.msra.mxu0 %v1542_v62  ;;  %v1578_v62 = vld [vmem:[#allocation7 + $0x194] ss:$8 sps:$4 sm:$0xff]  }
  0x99   :  { %363 = vmatpush1.bf16.msra.mxu1 %v1498_v55  ;;  %813 = vmatprep.subr.bf16.mxu0 %v1543_v63  ;;  %v1576_v63 = vld [vmem:[#allocation7 + $0x190] ss:$8 sps:$4 sm:$0xff]  }
  0x9a   :  { %1376 = vmatprep.subr.bf16.mxu1 %v1597_v4  ;;  %v1587_v4 = vld [vmem:[#allocation7 + $0x1c4] ss:$8 sps:$4 sm:$0xff]  }
  0x9c   :  { %381 = vmatmul.mubr.bf16.vlgmr.msra.gmra.mrb[4].mxu1 %v1884_v25  ;;  %814 = vmatpush1.bf16.msra.mxu0 %v1545_v0  ;;  %v1581_v0 = vld [vmem:[#allocation7 + $0x1a4] ss:$8 sps:$4 sm:$0xff]  }
  0x9d   :  { %815 = vmatprep.subr.bf16.mxu0 %v1546_v1  ;;  %1377 = vmatpush3.bf16.msra.mxu1 %v1598_v5  ;;  %v1579_v1 = vld [vmem:[#allocation7 + $0x1a0] ss:$8 sps:$4 sm:$0xff]   ;;  %v137_v5 = vsub.s32 2, %v1888_v17 }
  0x9e   :  { %1378 = vmatprep.subr.bf16.mxu1 %v1599_v6  ;;  %v1585_v6 = vld [vmem:[#allocation7 + $0x1c0] ss:$8 sps:$4 sm:$0xff]  }
  0xa0   :  { %816 = vmatpush1.bf16.msra.mxu0 %v1548_v2  ;;  %v1584_v2 = vld [vmem:[#allocation7 + $0x1b4] ss:$8 sps:$4 sm:$0xff]  }
  0xa1   :  { %826 = vmatprep.subr.bf16.mxu0 %v1551_v3  ;;  %1379 = vmatpush3.bf16.msra.mxu1 %v1600_v7  ;;  %v1582_v3 = vld [vmem:[#allocation7 + $0x1b0] ss:$8 sps:$4 sm:$0xff]   ;;  %v138_v7 = vrot.slane %v1894_v19, %v137_v5 }
  0xa2   :  { %1380 = vmatprep.subr.bf16.mxu1 %v1601_v8  ;;  %v1590_v8 = vld [vmem:[#allocation7 + $0x1d4] ss:$8 sps:$4 sm:$0xff]  }
  0xa3   :  { %v1610_v19 = vld [vmem:[#allocation8 + $0x30] sm:$0xff]  }
  0xa5   :  { %1381 = vmatpush3.bf16.msra.mxu1 %v1602_v9  ;;  %v1588_v9 = vld [vmem:[#allocation7 + $0x1d0] ss:$8 sps:$4 sm:$0xff]  }
  0xa6   :  { %1382 = vmatprep.subr.bf16.mxu1 %v1603_v10 }
  0xa9   :  { %1383 = vmatpush3.bf16.msra.mxu1 %v1604_v11  ;;  %v1593_v11 = vld [vmem:[#allocation7 + $0x1e4] ss:$8 sps:$4 sm:$0xff]  }
  0xaa   :  { %1384 = vmatprep.subr.bf16.mxu1 %v1605_v12  ;;  %v1591_v12 = vld [vmem:[#allocation7 + $0x1e0] ss:$8 sps:$4 sm:$0xff]  }
  0xad   :  { %1385 = vmatpush3.bf16.msra.mxu1 %v1606_v13 }
  0xae   :  { %1386 = vmatprep.subr.bf16.mxu1 %v1607_v14  ;;  %v1596_v14 = vld [vmem:[#allocation7 + $0x1f4] ss:$8 sps:$4 sm:$0xff]  }
  0xb1   :  { %1387 = vmatpush3.bf16.msra.mxu1 %v1608_v15  ;;  %v1594_v15 = vld [vmem:[#allocation7 + $0x1f0] ss:$8 sps:$4 sm:$0xff]  }
  0xb2   :  { %1388 = vmatprep.subr.bf16.mxu1 %v1609_v18 }
  0xb5   :  { %1389 = vmatpush3.bf16.msra.mxu1 %v1610_v19 }
  0xb6   :  { %1390 = vmatprep.subr.bf16.mxu1 %v1611_v20 }
 0x14f   :  { %v341_v23 = vpop.f32.mrb[0].mxu1 }
 0x150   :  { %v342_v24 = vadd.f32 %v341_v23, %v130_v21  ;;  %v343_v25 = vpop.f32.mrb[1].mxu1  ;;  %v1612_v21 = vld [vmem:[#allocation8 + $0x38] sm:$0xff]  }
 0x151   :  { %v344_v26 = vadd.f32 %v343_v25, %v134_v22  ;;  %v345_v27 = vpop.f32.mrb[2].mxu1  ;;  %1391 = vmatpush3.bf16.msra.mxu1 %v1612_v21  ;;  %v1773_v22 = vmov 0.0  }
 0x152   :  { %v389_v28 = vmul.f32 0.01, %v342_v24  ;;  %v346_v29 = vpop.f32.mrb[3].mxu1  ;;  %1409 = vmatprep.subr.bf16.mxu1 %v1773_v22 }
 0x153   :  { %v390_v30 = vmul.f32 0.01, %v344_v26 }
 0x154   :  { %v393_v31 = vmax.f32 %v342_v24, %v389_v28 }
 0x155   :  { %v394_v32 = vmax.f32 %v344_v26, %v390_v30 }
 0x156   :  { %v397_v35 = vpack.c.bf16 %v393_v31, %v393_v31 }
 0x157   :  { %v398_v33 = vpack.c.bf16 %v394_v32, %v394_v32  ;;  %v1613_v32 = vld [vmem:[#allocation10] sm:$0xff]  }
 0x159   :  { %817 = vmatprep.mubr.bf16.mxu0 %v398_v33 }
 0x15a   :  { %818 = vmatmul.mubr.bf16.vlgmr.msra.gmra.mrb[0].mxu0 %v397_v35  ;;  %v1615_v35 = vld [vmem:[#allocation10 + $0x10] sm:$0xff]  }
 0x15b   :  { %827 = vmatpush1.bf16.msra.mxu0 %v1549_v34  ;;  %v1614_v34 = vld [vmem:[#allocation10 + $0x8] sm:$0xff]  }
 0x15c   :  { %828 = vmatprep.subr.bf16.mxu0 %v1554_v36  ;;  %v1616_v36 = vld [vmem:[#allocation10 + $0x18] sm:$0xff]  }
 0x15f   :  { %829 = vmatpush1.bf16.msra.mxu0 %v1552_v37  ;;  %v1617_v37 = vld [vmem:[#allocation10 + $0x20] sm:$0xff]  }
 0x160   :  { %830 = vmatprep.subr.bf16.mxu0 %v1557_v38  ;;  %v1618_v38 = vld [vmem:[#allocation10 + $0x28] sm:$0xff]  }
 0x163   :  { %831 = vmatpush1.bf16.msra.mxu0 %v1555_v39  ;;  %v1619_v39 = vld [vmem:[#allocation10 + $0x30] sm:$0xff]  }
 0x164   :  { %832 = vmatprep.subr.bf16.mxu0 %v1560_v40  ;;  %v1620_v40 = vld [vmem:[#allocation10 + $0x38] sm:$0xff]  }
 0x167   :  { %833 = vmatpush1.bf16.msra.mxu0 %v1558_v41 }
 0x168   :  { %834 = vmatprep.subr.bf16.mxu0 %v1563_v42  ;;  %v1350_v42 = vld [vmem:[%s1929_s5 + $0x4] ss:$0 sm:$0xff] }
 0x16b   :  { %835 = vmatpush1.bf16.msra.mxu0 %v1561_v43 }
 0x16c   :  { %836 = vmatprep.subr.bf16.mxu0 %v1566_v44 }
 0x16f   :  { %837 = vmatpush1.bf16.msra.mxu0 %v1564_v46  ;;  %v382_v50 = vpop.f32.mrb[4].mxu1 }
 0x170   :  { %838 = vmatprep.subr.bf16.mxu0 %v1569_v47  ;;  %v384_v52 = vpop.f32.mrb[5].mxu1  ;;  %v383_v10 = vadd.f32 %v382_v50, %v138_v7 }
 0x171   :  { %v385_v53 = vadd.f32 %v384_v52, %v142_v48  ;;  %v386_v54 = vpop.f32.mrb[6].mxu1 }
 0x172   :  { %v387_v55 = vpop.f32.mrb[7].mxu1  ;;  %v391_v13 = vmul.f32 0.01, %v383_v10 }
 0x173   :  { %839 = vmatpush1.bf16.msra.mxu0 %v1567_v49  ;;  %v392_v57 = vmul.f32 0.01, %v385_v53 }
 0x174   :  { %840 = vmatprep.subr.bf16.mxu0 %v1572_v51  ;;  %v395_v16 = vmax.f32 %v383_v10, %v391_v13  ;;  %v1367_v51 = vld [vmem:[%s1929_s5 + $0x5] ss:$0 sm:$0xff] }
 0x175   :  { %v396_v59 = vmax.f32 %v385_v53, %v392_v57 }
 0x176   :  { %v399_v17 = vpack.c.bf16 %v395_v16, %v395_v16 }
 0x177   :  { %841 = vmatpush1.bf16.msra.mxu0 %v1570_v56  ;;  %v400_v61 = vpack.c.bf16 %v396_v59, %v396_v59  ;;  %v1164_v59 = vld [vmem:[%s1929_s5 + $0x6] sm:$0x1] }
 0x178   :  { %842 = vmatprep.subr.bf16.mxu0 %v1575_v58 }
 0x179   :  { %858 = vmatprep.mubr.bf16.mxu0 %v400_v61 }
 0x17b   :  { %843 = vmatpush1.bf16.msra.mxu0 %v1573_v60 }
 0x17c   :  { %844 = vmatprep.subr.bf16.mxu0 %v1578_v62 }
 0x17f   :  { %845 = vmatpush1.bf16.msra.mxu0 %v1576_v63 }
 0x180   :  { %846 = vmatprep.subr.bf16.mxu0 %v1581_v0 }
 0x183   :  { %847 = vmatpush1.bf16.msra.mxu0 %v1579_v1 }
 0x184   :  { %848 = vmatprep.subr.bf16.mxu0 %v1584_v2 }
 0x187   :  { %849 = vmatpush1.bf16.msra.mxu0 %v1582_v3 }
 0x188   :  { %850 = vmatprep.subr.bf16.mxu0 %v1587_v4 }
 0x18b   :  { %851 = vmatpush1.bf16.msra.mxu0 %v1585_v6 }
 0x18c   :  { %852 = vmatprep.subr.bf16.mxu0 %v1590_v8 }
 0x18f   :  { %853 = vmatpush1.bf16.msra.mxu0 %v1588_v9 }
 0x190   :  { %854 = vmatprep.subr.bf16.mxu0 %v1593_v11 }
 0x193   :  { %855 = vmatpush1.bf16.msra.mxu0 %v1591_v12 }
 0x194   :  { %856 = vmatprep.subr.bf16.mxu0 %v1596_v14 }
 0x197   :  { %857 = vmatpush1.bf16.msra.mxu0 %v1594_v15 }
 0x19a   :  { %859 = vmatmul.mubr.bf16.vlgmr.msra.gmra.mrb[0].mxu0 %v399_v17 }
 0x26d   :  { %v860_v23 = vpop.f32.mrb[0].mxu0 }
 0x26e   :  { %v867_v24 = vmul.f32 0.01, %v860_v23  ;;  %v862_v25 = vpop.f32.mrb[1].mxu0 }
 0x26f   :  { %v868_v26 = vmul.f32 0.01, %v862_v25  ;;  %v864_v27 = vpop.f32.mrb[2].mxu0 }
 0x270   :  { %v869_v28 = vmax.f32 %v860_v23, %v867_v24  ;;  %v865_v29 = vpop.f32.mrb[3].mxu0 }
 0x271   :  { %v870_v30 = vmax.f32 %v862_v25, %v868_v26 }
 0x272   :  { %v871_v33 = vpack.c.bf16 %v869_v28, %v869_v28 }
 0x273   :  { %v872_v31 = vpack.c.bf16 %v870_v30, %v870_v30 }
 0x275   :  { %1040 = vmatprep.mubr.bf16.mxu1 %v872_v31 }
 0x276   :  { %1041 = vmatmul.mubr.bf16.vlgmr.msra.gmra.mrb[8].mxu1 %v871_v33 }
 0x277   :  { %1410 = vmatpush3.bf16.msra.mxu1 %v1613_v32  ;;  %1425 = vmatprep.mubr.msk.bf16.mxu1 %vm1774_vm0, %v1773_v22 }
 0x278   :  { %1411 = vmatprep.subr.bf16.mxu1 %v1773_v22 }
 0x27b   :  { %1412 = vmatpush3.bf16.msra.mxu1 %v1614_v34 }
 0x27c   :  { %1413 = vmatprep.subr.bf16.mxu1 %v1773_v22 }
 0x27f   :  { %1414 = vmatpush3.bf16.msra.mxu1 %v1615_v35 }
 0x280   :  { %1415 = vmatprep.subr.bf16.mxu1 %v1773_v22 }
 0x283   :  { %1416 = vmatpush3.bf16.msra.mxu1 %v1616_v36 }
 0x284   :  { %1417 = vmatprep.subr.bf16.mxu1 %v1773_v22 }
 0x287   :  { %1418 = vmatpush3.bf16.msra.mxu1 %v1617_v37 }
 0x288   :  { %1419 = vmatprep.subr.bf16.mxu1 %v1773_v22 }
 0x28b   :  { %1420 = vmatpush3.bf16.msra.mxu1 %v1618_v38 }
 0x28c   :  { %1421 = vmatprep.subr.bf16.mxu1 %v1773_v22 }
 0x28f   :  { %1422 = vmatpush3.bf16.msra.mxu1 %v1619_v39 }
 0x290   :  { %1423 = vmatprep.subr.bf16.mxu1 %v1773_v22 }
 0x293   :  { %1424 = vmatpush3.bf16.msra.mxu1 %v1620_v40 }
 0x294   :  { %1429 = vmatprep.subr.mxu1 %v1773_v22 }
 0x349   :  { %v1392_v41 = vpop.f32.mrb[8].mxu1 }
 0x34a   :  { %v1393_v43 = vpop.f32.mrb[9].mxu1 }
 0x34b   :  { %v1394_v44 = vadd.f32 %v1393_v43, %v1392_v41  ;;  %v1395_v45 = vpop.f32.mrb[10].mxu1 }
 0x34c   :  { %v1396_v46 = vpop.f32.mrb[11].mxu1 }
 0x34d   :  { %v1043_v47 = vadd.f32 %v1394_v44, %v1350_v42 }
 0x34f   :  { %v1048_v48 = vmul.f32 0.01, %v1043_v47 }
 0x351   :  { %v1049_v49 = vmax.f32 %v1043_v47, %v1048_v48 }
 0x353   :  { %v1050_v50 = vpack.c.bf16 %v1049_v49, %v1049_v49 }
 0x355   :  { %1426 = vmatmul.mubr.bf16.vlgmr.msra.gmra.mrb[12].mxu1 %v1050_v50 }
 0x356   :  { %1431 = vmatprep.mubr.msk.f32.mxu1 %vm1774_vm0, %v1773_v22 }
 0x428   :  { %v1156_v52 = vpop.f32.mrb[12].mxu1 }
 0x429   :  { %v1157_v53 = vadd.f32 %v1367_v51, %v1156_v52  ;;  %v1427_v54 = vpop.f32.mrb[13].mxu1 }
 0x42a   :  { %v1159_v55 = vpop.f32.mrb[14].mxu1 }
 0x42b   :  { %v1162_v56 = vmul.f32 0.01, %v1157_v53  ;;  %v1428_v57 = vpop.f32.mrb[15].mxu1 }
 0x42d   :  { %v1163_v58 = vmax.f32 %v1157_v53, %v1162_v56 }
 0x42f   :  { %1430 = vmatpush3.xpose.msra.mxu1 %v1163_v58 }
 0x432   :  { %1432 = vmatmul.mubr.f32.vlgmr.msra.gmra.mrb[16].mxu1 %v1164_v59 }
 0x505   :  { %v1231_v60 = vpop.f32.mrb[16].mxu1 }
 0x506   :  { %v1433_v61 = vpop.f32.mrb[17].mxu1  ;;  %1236 = vst.msk [vmem:[#allocation11] sm:$0x1] %vm1235_vm1, %v1231_v60 }
 0x507   :  { %1742 = shalt.err (!%p1739_p2)
}
 0x508   :  { %s1743_s5 = scalar_lea.hbm %s1930_s6, 16 }
 0x509   :  { %p1744_p3 = scmp.ne.s32.totalorder %s1930_s6, %s1743_s5  ;;  %p1747_p4 = scmp.lt.u32.totalorder %s1743_s5, %s1930_s6 }
 0x50b   :  { %p1749_p5 = pnand %p1747_p4, %p1744_p3 }
 0x50d   :  { %1752 = shalt.err (!%p1749_p5)
}
 0x50e   :  { %1246 = dma.vmem_to_hbm [thread:$0]  %s1244_s17, 16, %s1930_s6, [#allocation4]  }
 0x50f   :  { %1759 = dma.done.wait [#allocation4], 16  }
 0x510   :  { %1760 = vsyncadd [#allocation4], 4294967280 }
 0x511   :  { %1250 = vsyncpa [#allocation3], 1 }
 0x512   :  { %1251 = vsyncpa [#allocation6], 1 }
 0x513   :  { %1252 = vsyncpa [#allocation9], 1 }
 0x514   :  { %1253 = vsyncpa [#allocation4], 1 }

</bundles_post_ra>
